<compile_context>
chip_gen: v5e
topology: v5e:2x2
jax: 0.10.0
libtpu: 0.0.40
codegen_flags: <defaults>
</compile_context>

<pallas_src>
import jax
import jax.numpy as jnp
from jax.experimental import pallas as pl
from jax.experimental.pallas import tpu as pltpu


def sideout_block_pallas(x, conv1_w, bn_gamma, bn_beta, bn_mean, bn_var,
                         conv2_w, conv2_b, eps=1e-5):
    """Fused SideoutBlock forward (inference).

    x:        (B, Cin, H, W) float32, NCHW
    conv1_w:  (Cmid, Cin, 3, 3)   (Cmid = Cin // 4, bias=False)
    bn_*:     (Cmid,)             BatchNorm2d inference params
    conv2_w:  (Cout, Cmid, 1, 1)
    conv2_b:  (Cout,)
    returns:  (B, Cout, H, W)
    """
    B, Cin, H, W = x.shape
    Cmid = conv1_w.shape[0]
    Cout = conv2_w.shape[0]
    HW = H * W
    assert conv1_w.shape == (Cmid, Cin, 3, 3)
    assert conv2_w.shape[:2] == (Cout, Cmid)

    # ---- host-side parameter folding (done once, tiny) ----
    scale = (bn_gamma / jnp.sqrt(bn_var + eps)).astype(jnp.float32)        # (Cmid,)
    w1f = conv1_w.astype(jnp.float32) * scale[:, None, None, None]         # BN scale folded
    b1f = (bn_beta - bn_mean * scale).astype(jnp.float32)                  # (Cmid,)
    w2 = conv2_w.reshape(Cout, Cmid).astype(jnp.float32)
    # Fold the 1x1 conv2 into the 3x3 conv1 (linear ops, dropout = identity at inference).
    w_fold = jnp.einsum("om,miyx->yxoi", w2, w1f)                          # (3,3,Cout,Cin) [ky,kx,o,i]
    b_fold = (w2 @ b1f + conv2_b.astype(jnp.float32)).reshape(Cout, 1)     # (Cout, 1)
    # One K-stacked GEMM weight: rows grouped by kx (column tap), cols grouped by ky (row tap).
    w_stack = jnp.transpose(w_fold, (1, 2, 0, 3)).reshape(3 * Cout, 3 * Cin)

    # Border-validity masks on the unpadded flattened (H*W) layout. The in-kernel lane
    # rolls wrap mod H*W; every wrapped column is zeroed by one of these masks, so no
    # zero-padded copy of x and no output crop is ever needed.
    q = jnp.arange(HW, dtype=jnp.int32)
    col = q % W
    masks = jnp.stack([
        (q >= W).astype(jnp.float32),              # dy=-1 patch: source row h-1 exists
        (q < (H - 1) * W).astype(jnp.float32),     # dy=+1 patch: source row h+1 exists
        (col != 0).astype(jnp.float32),            # dx=-1 tap:   source col w-1 exists
        (col != W - 1).astype(jnp.float32),        # dx=+1 tap:   source col w+1 exists
    ], axis=0)                                      # (4, HW)

    # Free reshape of contiguous minor dims: no padded copy of x is written to HBM.
    x_flat = x.reshape(B, Cin, HW).astype(jnp.float32)

    def kernel(x_ref, w_ref, b_ref, m_ref, o_ref):
        # x_ref: (1, Cin, HW), w_ref: (3*Cout, 3*Cin), b_ref: (Cout, 1), m_ref: (4, HW)
        xb = x_ref[0]                                              # (Cin, HW)
        m = m_ref[...]                                             # (4, HW)
        # Row (ky) shifts: two wide XLU lane rotations; wrapped rows zeroed by masks.
        p_up = pltpu.roll(xb, shift=W, axis=1) * m[0:1]            # source row h-1
        p_dn = pltpu.roll(xb, shift=HW - W, axis=1) * m[1:2]       # source row h+1
        patches = jnp.concatenate([p_up, xb, p_dn], axis=0)        # (3*Cin, HW)
        # Single MXU GEMM over all 9 taps (K = 3*Cin), producing per-kx partial outputs.
        y = jnp.dot(w_ref[...], patches,
                    preferred_element_type=jnp.float32)            # (3*Cout, HW)
        # Column (kx) shifts on the small GEMM output; wrapped/invalid columns masked.
        out = y[Cout:2 * Cout]                                           # kx = 0
        out = out + pltpu.roll(y[0:Cout], shift=1, axis=1) * m[2:3]      # kx = -1
        out = out + pltpu.roll(y[2 * Cout:3 * Cout], shift=HW - 1, axis=1) * m[3:4]  # kx = +1
        out = out + b_ref[...]
        o_ref[0] = out.astype(o_ref.dtype)

    out_flat = pl.pallas_call(
        kernel,
        out_shape=jax.ShapeDtypeStruct((B, Cout, HW), x.dtype),
        grid_spec=pltpu.PrefetchScalarGridSpec(
            num_scalar_prefetch=0,
            grid=(B,),
            in_specs=[
                pl.BlockSpec((1, Cin, HW), lambda b: (b, 0, 0)),
                pl.BlockSpec((3 * Cout, 3 * Cin), lambda b: (0, 0)),
                pl.BlockSpec((Cout, 1), lambda b: (0, 0)),
                pl.BlockSpec((4, HW), lambda b: (0, 0)),
            ],
            out_specs=pl.BlockSpec((1, Cout, HW), lambda b: (b, 0, 0)),
        ),
        compiler_params=pltpu.CompilerParams(
            dimension_semantics=("parallel",),
        ),
    )(x_flat, w_stack, b_fold, masks)

    # Free reshape back to NCHW; no crop pass needed.
    return out_flat.reshape(B, Cout, H, W)


def _reference(x, conv1_w, bn_gamma, bn_beta, bn_mean, bn_var, conv2_w, conv2_b, eps=1e-5):
    """Pure-JAX reference for SideoutBlock (inference)."""
    y = jax.lax.conv_general_dilated(
        x, conv1_w, window_strides=(1, 1), padding=((1, 1), (1, 1)),
        dimension_numbers=("NCHW", "OIHW", "NCHW"))
    scale = bn_gamma / jnp.sqrt(bn_var + eps)
    y = y * scale[None, :, None, None] + (bn_beta - bn_mean * scale)[None, :, None, None]
    # Dropout2d: identity at inference
    z = jnp.einsum("oc,bchw->bohw", conv2_w[:, :, 0, 0], y) + conv2_b[None, :, None, None]
    return z


if __name__ == "__main__":
    key = jax.random.PRNGKey(0)
    ks = jax.random.split(key, 8)

    # Small shapes consistent with the module: in_channels divisible by 4, sideout head -> 1 channel.
    B, Cin, H, W = 2, 16, 16, 16
    Cout = 1
    Cmid = Cin // 4

    x = jax.random.normal(ks[0], (B, Cin, H, W), dtype=jnp.float32)
    conv1_w = jax.random.normal(ks[1], (Cmid, Cin, 3, 3), dtype=jnp.float32) * 0.1
    bn_gamma = 1.0 + 0.1 * jax.random.normal(ks[2], (Cmid,), dtype=jnp.float32)
    bn_beta = 0.1 * jax.random.normal(ks[3], (Cmid,), dtype=jnp.float32)
    bn_mean = 0.1 * jax.random.normal(ks[4], (Cmid,), dtype=jnp.float32)
    bn_var = jnp.abs(jax.random.normal(ks[5], (Cmid,), dtype=jnp.float32)) + 0.5
    conv2_w = jax.random.normal(ks[6], (Cout, Cmid, 1, 1), dtype=jnp.float32) * 0.1
    conv2_b = 0.1 * jax.random.normal(ks[7], (Cout,), dtype=jnp.float32)

    fused = jax.jit(sideout_block_pallas)
    out = fused(x, conv1_w, bn_gamma, bn_beta, bn_mean, bn_var, conv2_w, conv2_b)
    out = jax.block_until_ready(out)

    ref = _reference(x, conv1_w, bn_gamma, bn_beta, bn_mean, bn_var, conv2_w, conv2_b)
    assert out.shape == (B, Cout, H, W)
    assert jnp.allclose(out, ref, atol=1e-3, rtol=1e-3), "mismatch vs JAX reference"

    print("KERNEL_OK")
</pallas_src>

<mosaic_0001>
module attributes {stable_mosaic.version = 11 : i64} {
  func.func @kernel(%arg0: i32, %arg1: memref<1x16x256xf32, #tpu.memory_space<vmem>>, %arg2: memref<3x48xf32, #tpu.memory_space<vmem>>, %arg3: memref<1x1xf32, #tpu.memory_space<vmem>>, %arg4: memref<4x256xf32, #tpu.memory_space<vmem>>, %arg5: memref<1x1x256xf32, #tpu.memory_space<vmem>>) attributes {dimension_semantics = [#tpu.dimension_semantics<parallel>], iteration_bounds = array<i64: 2>, scalar_prefetch = 0 : i64, scratch_operands = 0 : i64, tpu.core_type = #tpu.core_type<tc>, window_params = [{transform_indices = @transform_0, window_bounds = array<i64: 1, 16, 256>}, {pipeline_mode = #tpu.pipeline_mode<synchronous>, transform_indices = @transform_1, window_bounds = array<i64: 3, 48>}, {pipeline_mode = #tpu.pipeline_mode<synchronous>, transform_indices = @transform_2, window_bounds = array<i64: 1, 1>}, {pipeline_mode = #tpu.pipeline_mode<synchronous>, transform_indices = @transform_3, window_bounds = array<i64: 4, 256>}, {transform_indices = @transform_4, window_bounds = array<i64: 1, 1, 256>}]} {
    %c0 = arith.constant 0 : index
    %c0_0 = arith.constant 0 : index
    %c0_1 = arith.constant 0 : index
    %0 = vector.load %arg1[%c0, %c0_0, %c0_1] : memref<1x16x256xf32, #tpu.memory_space<vmem>>, vector<1x16x256xf32>
    %1 = vector.shape_cast %0 : vector<1x16x256xf32> to vector<16x256xf32>
    %c0_2 = arith.constant 0 : index
    %c0_3 = arith.constant 0 : index
    %2 = vector.load %arg4[%c0_2, %c0_3] : memref<4x256xf32, #tpu.memory_space<vmem>>, vector<4x256xf32>
    %c16_i32 = arith.constant 16 : i32
    %3 = tpu.dynamic_rotate %1 by %c16_i32 dim 1 : vector<16x256xf32>, i32 -> vector<16x256xf32>
    %4 = vector.extract_strided_slice %2 {offsets = [0, 0], sizes = [1, 256], strides = [1, 1]} : vector<4x256xf32> to vector<1x256xf32>
    %5 = vector.broadcast %4 : vector<1x256xf32> to vector<16x256xf32>
    %6 = arith.mulf %3, %5 : vector<16x256xf32>
    %c240_i32 = arith.constant 240 : i32
    %7 = tpu.dynamic_rotate %1 by %c240_i32 dim 1 : vector<16x256xf32>, i32 -> vector<16x256xf32>
    %8 = vector.extract_strided_slice %2 {offsets = [1, 0], sizes = [1, 256], strides = [1, 1]} : vector<4x256xf32> to vector<1x256xf32>
    %9 = vector.broadcast %8 : vector<1x256xf32> to vector<16x256xf32>
    %10 = arith.mulf %7, %9 : vector<16x256xf32>
    %11 = tpu.concatenate %6, %1, %10 in 0 : vector<16x256xf32>, vector<16x256xf32>, vector<16x256xf32> -> vector<48x256xf32>
    %c0_4 = arith.constant 0 : index
    %c0_5 = arith.constant 0 : index
    %12 = vector.load %arg2[%c0_4, %c0_5] : memref<3x48xf32, #tpu.memory_space<vmem>>, vector<3x48xf32>
    %cst = arith.constant dense<0.000000e+00> : vector<3x256xf32>
    %13 = tpu.matmul %12, %11, %cst {dimension_numbers = #tpu.dot_dimension_numbers<[1], [0], [0], [1], [0, 0, 1, 1], [], []>} : vector<3x48xf32>, vector<48x256xf32>, vector<3x256xf32> -> vector<3x256xf32>
    %14 = vector.extract_strided_slice %13 {offsets = [1, 0], sizes = [1, 256], strides = [1, 1]} : vector<3x256xf32> to vector<1x256xf32>
    %15 = vector.extract_strided_slice %13 {offsets = [0, 0], sizes = [1, 256], strides = [1, 1]} : vector<3x256xf32> to vector<1x256xf32>
    %c1_i32 = arith.constant 1 : i32
    %16 = tpu.dynamic_rotate %15 by %c1_i32 dim 1 : vector<1x256xf32>, i32 -> vector<1x256xf32>
    %17 = vector.extract_strided_slice %2 {offsets = [2, 0], sizes = [1, 256], strides = [1, 1]} : vector<4x256xf32> to vector<1x256xf32>
    %18 = arith.mulf %16, %17 : vector<1x256xf32>
    %19 = arith.addf %14, %18 : vector<1x256xf32>
    %20 = vector.extract_strided_slice %13 {offsets = [2, 0], sizes = [1, 256], strides = [1, 1]} : vector<3x256xf32> to vector<1x256xf32>
    %c255_i32 = arith.constant 255 : i32
    %21 = tpu.dynamic_rotate %20 by %c255_i32 dim 1 : vector<1x256xf32>, i32 -> vector<1x256xf32>
    %22 = vector.extract_strided_slice %2 {offsets = [3, 0], sizes = [1, 256], strides = [1, 1]} : vector<4x256xf32> to vector<1x256xf32>
    %23 = arith.mulf %21, %22 : vector<1x256xf32>
    %24 = arith.addf %19, %23 : vector<1x256xf32>
    %c0_6 = arith.constant 0 : index
    %c0_7 = arith.constant 0 : index
    %25 = vector.load %arg3[%c0_6, %c0_7] : memref<1x1xf32, #tpu.memory_space<vmem>>, vector<1x1xf32>
    %26 = vector.broadcast %25 : vector<1x1xf32> to vector<1x256xf32>
    %27 = arith.addf %24, %26 : vector<1x256xf32>
    %c0_8 = arith.constant 0 : index
    %c0_9 = arith.constant 0 : index
    %c0_10 = arith.constant 0 : index
    %28 = vector.load %arg5[%c0_8, %c0_9, %c0_10] : memref<1x1x256xf32, #tpu.memory_space<vmem>>, vector<1x1x256xf32>
    %29 = vector.shape_cast %28 : vector<1x1x256xf32> to vector<1x256xf32>
    %30 = vector.shape_cast %27 : vector<1x256xf32> to vector<1x1x256xf32>
    tpu.vector_store %arg5[%c0_8, %c0_9, %c0_10], %30 {strides = array<i32>} : memref<1x1x256xf32, #tpu.memory_space<vmem>>, vector<1x1x256xf32>,
    return
  }
  func.func @transform_0(%arg0: i32) -> (i32, i32, i32) {
    %c0_i32 = arith.constant 0 : i32
    %c0_i32_0 = arith.constant 0 : i32
    %c0_i32_1 = arith.constant 0 : i32
    return %arg0, %c0_i32, %c0_i32_0 : i32, i32, i32
  }
  func.func @transform_1(%arg0: i32) -> (i32, i32) {
    %c0_i32 = arith.constant 0 : i32
    %c0_i32_0 = arith.constant 0 : i32
    %c0_i32_1 = arith.constant 0 : i32
    return %c0_i32, %c0_i32_0 : i32, i32
  }
  func.func @transform_2(%arg0: i32) -> (i32, i32) {
    %c0_i32 = arith.constant 0 : i32
    %c0_i32_0 = arith.constant 0 : i32
    %c0_i32_1 = arith.constant 0 : i32
    return %c0_i32, %c0_i32_0 : i32, i32
  }
  func.func @transform_3(%arg0: i32) -> (i32, i32) {
    %c0_i32 = arith.constant 0 : i32
    %c0_i32_0 = arith.constant 0 : i32
    %c0_i32_1 = arith.constant 0 : i32
    return %c0_i32, %c0_i32_0 : i32, i32
  }
  func.func @transform_4(%arg0: i32) -> (i32, i32, i32) {
    %c0_i32 = arith.constant 0 : i32
    %c0_i32_0 = arith.constant 0 : i32
    %c0_i32_1 = arith.constant 0 : i32
    return %arg0, %c0_i32, %c0_i32_0 : i32, i32, i32
  }
}

</mosaic_0001>

<bundles_post_ra>
// kernel: sideout_block_pallas.1
= control target key start
LH: loop header
LB: loop body
LE: loop exit
PB: predicated region body
PF: predicated region fallthrough
CT: control target
= control target key end

     0   :  { %s487_s17 = smov 0   ;;  %s540_s0 = inlined_call_operand.vmem [shape: f32[2,16,256], index: 0, kind: input, shape index: {}]   ;;  %s541_s1 = inlined_call_operand.vmem [shape: f32[3,48], index: 1, kind: input, shape index: {}]   ;;  %s542_s2 = inlined_call_operand.<no memory space> [shape: f32[1,1], index: 2, kind: input, shape index: {}]   ;;  %s543_s3 = inlined_call_operand.vmem [shape: f32[4,256], index: 3, kind: input, shape index: {}]   ;;  %s544_s4 = inlined_call_operand.vmem [shape: f32[2,1,256], index: 4, kind: output, shape index: {}]  }
   0x1   :  { %v9_v0 = vstv %s542_s2 }
   0x2   :  { %10 = vst [vmem:[#allocation2] sm:$0x1] %v9_v0 }
   0x3 LB: > { %s419_s18 = sadd.s32 4294967295, %s452_s17   ;;  %p423_p0 = scmp.ge.s32.totalorder %s452_s17, 1  ;;  %s452_s17 = sphi %s487_s17, %s16_s17  }
   0x4   : > { %p164_p1 = scmp.lt.s32.totalorder %s452_s17, 3 }
   0x6   : > { %p165_p2 = pnand %p423_p0, %p164_p1 }
   0x7   : > { %p189_p3 = scmp.lt.s32.totalorder (!%p165_p2), %s419_s18, 1  ;;  %s454_s22 = smov (!%p165_p2), 112  }
   0x8   : > { %168 = sbr.rel (%p165_p2) target bundleno = 417 (0x1a1), region = 36  ;;  %s455_s23 = smov (!%p165_p2), 16  }
   0x9   : > { %s457_s28 = smov (!%p165_p2), 1   ;;  %s458_s29 = smov (!%p165_p2), 127  }
   0xd   : > { %s546_s18 = smov (!%p189_p3, %s419_s18), 1  ;;  %v211_v5 = vlaneseq  ;;  %v504_v6 = vld [vmem:[%s543_s3] sm:$0xff]  ;;  %vm253_vm2 = vcmask 392192   ;;  %v456_v41 = vmov 0   ;;  %v345_v45 = vld [vmem:[#allocation2] sm:$0x1] }
   0xe   : > { %s431_s2 = sshll.u32 %s546_s18, 5  ;;  %v242_v11 = vperm.slane %v504_v6, 1  ;;  %v243_v12 = vperm.slane %v504_v6, 5  ;;  %v219_v17 = vperm.slane %v504_v6, 0  ;;  %v220_v24 = vperm.slane %v504_v6, 4  ;;  %445 = vset.pattern.permute.xlu0 %v456_v41  ;;  %s426_s30 = sshll.u32 %s546_s18, 1 }
   0xf   : > { %s193_s21 = scalar_lea.vmem %s540_s0, %s431_s2  ;;  %v507_v10 = vand.u32 127, %v211_v5  ;;  %v252_v40 = vld [vmem:[%s541_s1] sm:$0x7]  ;;  %v304_v48 = vperm.slane %v504_v6, 2  ;;  %v305_v49 = vperm.slane %v504_v6, 6  ;;  %v331_v51 = vperm.slane %v504_v6, 3  ;;  %s197_s7 = scalar_lea.vmem %s544_s4, %s426_s30 }
  0x10   : > { %v200_v1 = vld [vmem:[%s193_s21 + $0x10] sm:$0xff]  ;;  %v198_v2 = vld [vmem:[%s193_s21] sm:$0xff]  ;;  %v201_v3 = vld [vmem:[%s193_s21 + $0x18] sm:$0xff]  ;;  %v246_v13 = vperm.slane %v242_v11, 1  ;;  %v247_v14 = vperm.slane %v243_v12, 1  ;;  %v223_v28 = vperm.slane %v219_v17, 0 }
  0x11   : > { %231 = vrot.lane.b32.xlu0 %v200_v1, %s454_s22  ;;  %229 = vrot.lane.b32.xlu1 %v198_v2, %s454_s22  ;;  %v199_v4 = vld [vmem:[%s193_s21 + $0x8] sm:$0xff]  ;;  %vm237_vm0 = vcmp.lt.s32.totalorder %v507_v10, 112  ;;  %vm213_vm1 = vcmp.lt.s32.totalorder %v507_v10, 16  ;;  %v224_v30 = vperm.slane %v220_v24, 0  ;;  %vm301_vm3 = vcmp.lt.s32.totalorder %v507_v10, 1 }
  0x12   : > { %205 = vrot.lane.b32.xlu2 %v200_v1, %s455_s23  ;;  %vm328_vm4 = vcmp.lt.s32.totalorder %v507_v10, 127  ;;  %v332_v52 = vperm.slane %v504_v6, 7  ;;  %vm363_vm5 = vcmp.lt.s32.totalorder %v211_v5, 256 }
  0x19   : > { %235 = vrot.lane.b32.xlu0 %v201_v3, %s454_s22  ;;  %233 = vrot.lane.b32.xlu1 %v199_v4, %s454_s22 }
  0x1a   : > { %209 = vrot.lane.b32.xlu2 %v201_v3, %s455_s23 }
  0x21   : > { %203 = vrot.lane.b32.xlu0 %v198_v2, %s455_s23  ;;  %207 = vrot.lane.b32.xlu1 %v199_v4, %s455_s23 }
  0x6c   : > { %v206_v9 = vpop.permute.xlu2 %205 }
  0x74   : > { %v210_v25 = vpop.permute.xlu2 %209 }
  0x75   : > { %v217_v29 = vsel %vm213_vm1, %v210_v25, %v206_v9  ;;  %v215_v31 = vsel %vm213_vm1, %v206_v9, %v210_v25 }
  0x76   : > { %v227_v36 = vmul.f32 %v223_v28, %v217_v29  ;;  %v228_v37 = vmul.f32 %v224_v30, %v215_v31 }
  0x83   : > { %v232_v7 = vpop.permute.xlu0 %231  ;;  %v230_v8 = vpop.permute.xlu1 %229 }
  0x8b   : > { %v236_v15 = vpop.permute.xlu0 %235  ;;  %v234_v16 = vpop.permute.xlu1 %233 }
  0x8c   : > { %v238_v18 = vsel %vm237_vm0, %v230_v8, %v234_v16  ;;  %v240_v19 = vsel %vm237_vm0, %v234_v16, %v230_v8  ;;  %v239_v20 = vsel %vm237_vm0, %v232_v7, %v236_v15  ;;  %v241_v21 = vsel %vm237_vm0, %v236_v15, %v232_v7 }
  0x8d   : > { %v250_v22 = vmul.f32 %v246_v13, %v239_v20  ;;  %v251_v23 = vmul.f32 %v247_v14, %v241_v21  ;;  %v248_v26 = vmul.f32 %v246_v13, %v238_v18  ;;  %v249_v27 = vmul.f32 %v247_v14, %v240_v19 }
  0x8f   : > { %267 = vmatpush.msra.mxu0 %v250_v22  ;;  %287 = vmatpush.msra.mxu1 %v251_v23 }
  0x91   : > { %268 = vmatpush.msra.mxu0 %v248_v26  ;;  %288 = vmatpush.msra.mxu1 %v249_v27 }
  0x93   : > { %269 = vmatpush.msra.mxu0 %v200_v1  ;;  %289 = vmatpush.msra.mxu1 %v201_v3  ;;  %v204_v32 = vpop.permute.xlu0 %203  ;;  %v208_v33 = vpop.permute.xlu1 %207 }
  0x94   : > { %v214_v34 = vsel %vm213_vm1, %v204_v32, %v208_v33  ;;  %v216_v35 = vsel %vm213_vm1, %v208_v33, %v204_v32 }
  0x95   : > { %270 = vmatpush.msra.mxu0 %v198_v2  ;;  %290 = vmatpush.msra.mxu1 %v199_v4  ;;  %v225_v38 = vmul.f32 %v223_v28, %v216_v35  ;;  %v226_v39 = vmul.f32 %v224_v30, %v214_v34 }
  0x97   : > { %271 = vmatpush.msra.mxu0 %v227_v36  ;;  %291 = vmatpush.msra.mxu1 %v228_v37 }
  0x99   : > { %272 = vmatpush.msra.mxu0 %v225_v38  ;;  %292 = vmatpush.msra.mxu1 %v226_v39 }
  0x9a   : > { %427 = vmatmul.msk.f32.vlgmr.msra.gmra.mxu0 %vm253_vm2, %v252_v40  ;;  %428 = vmatmul.msk.f32.vlgmr.msra.gmra.mxu1 %vm253_vm2, %v252_v40 }
 0x117   : > { %v274_v42 = vpop.f32.mrf.mxu0  ;;  %v294_v43 = vpop.f32.mrf.mxu1 }
 0x118   : > { %v320_v44 = vrot.slane %v274_v42, 2  ;;  %297 = vrot.lane.b32.xlu2 %v274_v42, %s457_s28  ;;  %299 = vrot.lane.b32.xlu0 %v294_v43, %s457_s28  ;;  %v321_v46 = vrot.slane %v294_v43, 2 }
 0x11a   : > { %324 = vrot.lane.b32.xlu1 %v320_v44, %s458_s29 }
 0x120   : > { %348 = vperm.xlu0 %445, %v345_v45   ;;  %326 = vrot.lane.b32.xlu2 %v321_v46, %s458_s29 }
 0x172   : > { %v298_v47 = vpop.permute.xlu2 %297 }
 0x17a   : > { %v327_v55 = vpop.permute.xlu2 %326 }
 0x18a   : > { %v300_v50 = vpop.permute.xlu0 %299 }
 0x18b   : > { %v302_v53 = vsel %vm301_vm3, %v298_v47, %v300_v50  ;;  %v303_v54 = vsel %vm301_vm3, %v300_v50, %v298_v47 }
 0x18c   : > { %v308_v56 = vmul.f32 %v304_v48, %v303_v54  ;;  %v309_v57 = vmul.f32 %v305_v49, %v302_v53  ;;  %v325_v58 = vpop.permute.xlu1 %324 }
 0x18d   : > { %v329_v59 = vsel %vm328_vm4, %v325_v58, %v327_v55  ;;  %v330_v60 = vsel %vm328_vm4, %v327_v55, %v325_v58 }
 0x18e   : > { %v312_v61 = vrot.slane %v308_v56, 7  ;;  %v313_v62 = vrot.slane %v309_v57, 7  ;;  %v335_v63 = vmul.f32 %v331_v51, %v329_v59  ;;  %v336_v0 = vmul.f32 %v332_v52, %v330_v60 }
 0x190   : > { %v316_v1 = vadd.f32 %v312_v61, %v274_v42  ;;  %v317_v2 = vadd.f32 %v313_v62, %v294_v43  ;;  %v339_v3 = vrot.slane %v335_v63, 7  ;;  %v340_v4 = vrot.slane %v336_v0, 7 }
 0x192   : > { %v349_v7 = vpop.permute.xlu0 %348  ;;  %v343_v8 = vadd.f32 %v339_v3, %v316_v1  ;;  %v344_v6 = vadd.f32 %v340_v4, %v317_v2 }
 0x193   : > { %v351_v9 = vperm.slane %v349_v7, 0 }
 0x195   : > { %v352_v10 = vadd.f32 %v351_v9, %v343_v8  ;;  %v353_v11 = vadd.f32 %v351_v9, %v344_v6 }
 0x197   : > { %356 = vst [vmem:[#allocation1] sm:$0xff] %v352_v10 }
 0x198   : > { %357 = vst [vmem:[#allocation1 + $0x9] sm:$0xff] %v353_v11 }
 0x19f   : > { %v359_v12 = vld [vmem:[#allocation1 + $0x1] ss:$9 sm:$0xff] }
 0x1a0   : > { %365 = vst.msk [vmem:[%s197_s7] sm:$0x3] %vm363_vm5, %v359_v12 }
 0x1a1 PF: > { %s16_s17 = sadd.s32 1, %s452_s17  }
 0x1a2   : > { %p13_p4 = scmp.ge.s32.totalorder %s16_s17, 4  }
 0x1a4   :  { %15 = sbr.rel (!%p13_p4) target bundleno = 3 (0x3), region = 67 }

</bundles_post_ra>
